<compile_context>
chip_gen: v6e
topology: v6e:2x2x1
jax: 0.10.0
libtpu: 0.0.40
codegen_flags: <defaults>
</compile_context>

<pallas_src>
import jax
import jax.numpy as jnp
from jax.experimental import pallas as pl
from jax.experimental.pallas import tpu as pltpu

C_IN, C_H1, C_H2 = 256, 64, 16
LEAKY_SLOPE = 0.01


def _round_up(a, b):
    return ((a + b - 1) // b) * b


def _leaky_relu(h):
    # max(h, 0.01*h) == LeakyReLU(0.01) for slopes in (0, 1); 2 VALU ops.
    return jnp.maximum(h, LEAKY_SLOPE * h)


def weighting_kernel(x_ref, w1_ref, b1_ref, w2_ref, b2_ref, w3_ref, b3_ref,
                     o_ref):
    # x block: (1, 256, TN) in native NCW layout.  astype is a no-op for the
    # recommended bf16 input and only pays for an f32 fallback input.
    x = x_ref[0].astype(jnp.bfloat16)                           # (256, TN)

    # fc1: (64, 256) @ (256, TN), bf16 MXU, f32 accumulation.
    h = jnp.dot(w1_ref[...], x, preferred_element_type=jnp.float32)
    h = _leaky_relu(h + b1_ref[...])                            # (64, TN) f32

    # fc2: (16, 64) @ (64, TN), single bf16 MXU pass, f32 accumulation.
    h = jnp.dot(w2_ref[...], h.astype(jnp.bfloat16),
                preferred_element_type=jnp.float32)
    h = _leaky_relu(h + b2_ref[...])                            # (16, TN) f32

    # fc3: 16 -> 1 as VPU multiply + sublane reduction; b3 is an SMEM scalar.
    s = jnp.sum(w3_ref[...] * h, axis=0, keepdims=True) + b3_ref[0, 0]

    # tanh is monotonic and only top-k *indices* are consumed downstream, so
    # it is omitted here (apply jnp.tanh(s) if raw scores are ever needed).
    o_ref[0] = s                                                # (1, TN)


def weighting_scores(x_bcn, params, tn):
    """x_bcn: (B, 256, N) NCW -> (monotone-equivalent) scores (B, N) f32."""
    B, C, N = x_bcn.shape
    assert C == C_IN and tn % 128 == 0
    w1, b1, w2, b2, w3, b3 = params

    out = pl.pallas_call(
        weighting_kernel,
        out_shape=jax.ShapeDtypeStruct((B, 1, N), jnp.float32),
        grid_spec=pltpu.PrefetchScalarGridSpec(
            num_scalar_prefetch=0,
            grid=(B, pl.cdiv(N, tn)),          # clipped last block, no jnp.pad
            in_specs=[
                pl.BlockSpec((1, C_IN, tn), lambda b, n: (b, 0, n)),
                pl.BlockSpec((C_H1, C_IN), lambda b, n: (0, 0)),
                pl.BlockSpec((C_H1, 1), lambda b, n: (0, 0)),
                pl.BlockSpec((C_H2, C_H1), lambda b, n: (0, 0)),
                pl.BlockSpec((C_H2, 1), lambda b, n: (0, 0)),
                pl.BlockSpec((C_H2, 1), lambda b, n: (0, 0)),
                pl.BlockSpec(memory_space=pltpu.SMEM),          # b3 scalar
            ],
            out_specs=pl.BlockSpec((1, 1, tn), lambda b, n: (b, 0, n)),
        ),
        compiler_params=pltpu.CompilerParams(
            dimension_semantics=("parallel", "parallel")),
    )(x_bcn, w1, b1, w2, b2, w3, b3)
    return out[:, 0, :]                                         # (B, N)


def _pick_tn(N, B, dtype, tn=None):
    """Sequence tile: big enough to amortize per-step overhead, VMEM-safe."""
    if tn is None:
        tn = 8192 if dtype == jnp.bfloat16 else 4096   # ~11 MiB/tile either way
    tn = min(tn, _round_up(N, 128))
    # Keep >= 2 total grid steps so v7x's two TensorCores both get work and
    # software pipelining engages (B >= 2 already guarantees this).
    if B == 1 and N > 128 and tn >= _round_up(N, 128):
        tn = _round_up((N + 1) // 2, 128)
    return max(tn, 128)


def weighting_layer_forward(x_bcn, params, K=64, tn=None):
    """Reproduces WeightingLayer.forward.

    x_bcn: (B, 256, N) in the PyTorch NCW layout (bf16 recommended, f32 ok).
    Returns flattened top-K indices, shape (B*K,), int32.
    """
    B, C, N = x_bcn.shape
    assert C == C_IN and N >= K
    tn = _pick_tn(N, B, x_bcn.dtype, tn)
    scores = weighting_scores(x_bcn, params, tn)                # (B, N)
    # torch.topk(x, K, dim=-1) on (B, 1, N), then .flatten().
    _, topk_idx = jax.lax.top_k(scores, K)                      # (B, K)
    return topk_idx.reshape(-1).astype(jnp.int32)               # (B*K,)


def weighting_scores_ref(x_bcn, params):
    """Pure-jnp reference using the same bf16/f32 mixed precision."""
    w1, b1, w2, b2, w3, b3 = params
    x = x_bcn.astype(jnp.bfloat16)
    h = jnp.einsum("oc,bcn->bon", w1, x,
                   preferred_element_type=jnp.float32) + b1[None]
    h = jnp.maximum(h, LEAKY_SLOPE * h)
    h = jnp.einsum("oc,bcn->bon", w2, h.astype(jnp.bfloat16),
                   preferred_element_type=jnp.float32) + b2[None]
    h = jnp.maximum(h, LEAKY_SLOPE * h)
    return jnp.sum(w3[None] * h, axis=1) + b3[0, 0]             # (B, N)


def init_params(key):
    """Deterministic synthetic parameters matching Conv1d(.,.,1) shapes.

    PyTorch Conv1d weight is (out, in, 1); dropping the trailing 1 gives the
    (Cout, Cin) layout the kernel consumes -- no transpose needed.  w1/w2 are
    stored in bf16 (they feed the bf16 MXU matmuls).
    """
    k1, k2, k3, k4, k5, k6 = jax.random.split(key, 6)
    w1 = (jax.random.normal(k1, (C_H1, C_IN), jnp.float32) * 0.05
          ).astype(jnp.bfloat16)                                # (64, 256)
    b1 = jax.random.normal(k2, (C_H1, 1), jnp.float32) * 0.05   # (64, 1)
    w2 = (jax.random.normal(k3, (C_H2, C_H1), jnp.float32) * 0.05
          ).astype(jnp.bfloat16)                                # (16, 64)
    b2 = jax.random.normal(k4, (C_H2, 1), jnp.float32) * 0.05   # (16, 1)
    w3 = jax.random.normal(k5, (C_H2, 1), jnp.float32) * 0.05   # (16, 1)
    b3 = jax.random.normal(k6, (1, 1), jnp.float32) * 0.05      # (1, 1)
    return (w1, b1, w2, b2, w3, b3)


if __name__ == "__main__":
    key = jax.random.PRNGKey(0)
    kp, kx = jax.random.split(key)
    params = init_params(kp)

    # Small shapes: B=2, N=300 (exercises the clipped last block), K=64.
    B, N, K = 2, 300, 64
    # bf16 input as recommended (halves HBM traffic of the mem-bound kernel).
    x = jax.random.normal(kx, (B, C_IN, N), jnp.float32).astype(jnp.bfloat16)

    # Score path: compare against a pure-jnp reference at matching precision.
    scores = weighting_scores(x, params, _pick_tn(N, B, x.dtype))
    jax.block_until_ready(scores)
    ref = weighting_scores_ref(x, params)
    assert scores.shape == (B, N)
    assert bool(jnp.all(jnp.isfinite(scores)))
    max_err = float(jnp.max(jnp.abs(scores - ref)))
    assert max_err < 2e-3, f"score mismatch vs reference: {max_err}"

    # Full forward: flattened top-K indices.
    topk_indices = weighting_layer_forward(x, params, K=K)
    jax.block_until_ready(topk_indices)
    assert topk_indices.shape == (B * K,)
    assert topk_indices.dtype == jnp.int32
    # Clipped-last-block handling must never surface an out-of-range index.
    assert bool(jnp.all((topk_indices >= 0) & (topk_indices < N)))
    print("KERNEL_OK")
</pallas_src>

<mosaic_0001>
module attributes {stable_mosaic.version = 11 : i64} {
  func.func @weighting_kernel(%arg0: i32, %arg1: i32, %arg2: memref<1x256x384xbf16, #tpu.memory_space<vmem>>, %arg3: memref<64x256xbf16, #tpu.memory_space<vmem>>, %arg4: memref<64x1xf32, #tpu.memory_space<vmem>>, %arg5: memref<16x64xbf16, #tpu.memory_space<vmem>>, %arg6: memref<16x1xf32, #tpu.memory_space<vmem>>, %arg7: memref<16x1xf32, #tpu.memory_space<vmem>>, %arg8: memref<1x1xf32, #tpu.memory_space<smem>>, %arg9: memref<1x1x384xf32, #tpu.memory_space<vmem>>) attributes {dimension_semantics = [#tpu.dimension_semantics<parallel>, #tpu.dimension_semantics<parallel>], iteration_bounds = array<i64: 2, 1>, scalar_prefetch = 0 : i64, scratch_operands = 0 : i64, tpu.core_type = #tpu.core_type<tc>, window_params = [{transform_indices = @transform_0, window_bounds = array<i64: 1, 256, 384>}, {pipeline_mode = #tpu.pipeline_mode<synchronous>, transform_indices = @transform_1, window_bounds = array<i64: 64, 256>}, {pipeline_mode = #tpu.pipeline_mode<synchronous>, transform_indices = @transform_2, window_bounds = array<i64: 64, 1>}, {pipeline_mode = #tpu.pipeline_mode<synchronous>, transform_indices = @transform_3, window_bounds = array<i64: 16, 64>}, {pipeline_mode = #tpu.pipeline_mode<synchronous>, transform_indices = @transform_4, window_bounds = array<i64: 16, 1>}, {pipeline_mode = #tpu.pipeline_mode<synchronous>, transform_indices = @transform_5, window_bounds = array<i64: 16, 1>}, {transform_indices = @transform_6, window_bounds = array<i64: 1, 1>}, {transform_indices = @transform_7, window_bounds = array<i64: 1, 1, 384>}]} {
    %c0 = arith.constant 0 : index
    %c0_0 = arith.constant 0 : index
    %c0_1 = arith.constant 0 : index
    %0 = vector.load %arg2[%c0, %c0_0, %c0_1] : memref<1x256x384xbf16, #tpu.memory_space<vmem>>, vector<1x256x384xbf16>
    %1 = vector.shape_cast %0 : vector<1x256x384xbf16> to vector<256x384xbf16>
    %c0_2 = arith.constant 0 : index
    %c0_3 = arith.constant 0 : index
    %2 = vector.load %arg3[%c0_2, %c0_3] : memref<64x256xbf16, #tpu.memory_space<vmem>>, vector<64x256xbf16>
    %cst = arith.constant dense<0.000000e+00> : vector<64x384xf32>
    %3 = tpu.matmul %2, %1, %cst {dimension_numbers = #tpu.dot_dimension_numbers<[1], [0], [0], [1], [0, 0, 1, 1], [], []>} : vector<64x256xbf16>, vector<256x384xbf16>, vector<64x384xf32> -> vector<64x384xf32>
    %c0_4 = arith.constant 0 : index
    %c0_5 = arith.constant 0 : index
    %4 = vector.load %arg4[%c0_4, %c0_5] : memref<64x1xf32, #tpu.memory_space<vmem>>, vector<64x1xf32>
    %5 = vector.broadcast %4 : vector<64x1xf32> to vector<64x384xf32>
    %6 = arith.addf %3, %5 : vector<64x384xf32>
    %cst_6 = arith.constant 0.00999999977 : f32
    %7 = vector.broadcast %cst_6 : f32 to vector<64x384xf32>
    %8 = arith.mulf %7, %6 : vector<64x384xf32>
    %9 = arith.maximumf %6, %8 : vector<64x384xf32>
    %c0_7 = arith.constant 0 : index
    %c0_8 = arith.constant 0 : index
    %10 = vector.load %arg5[%c0_7, %c0_8] : memref<16x64xbf16, #tpu.memory_space<vmem>>, vector<16x64xbf16>
    %11 = arith.truncf %9 : vector<64x384xf32> to vector<64x384xbf16>
    %cst_9 = arith.constant dense<0.000000e+00> : vector<16x384xf32>
    %12 = tpu.matmul %10, %11, %cst_9 {dimension_numbers = #tpu.dot_dimension_numbers<[1], [0], [0], [1], [0, 0, 1, 1], [], []>} : vector<16x64xbf16>, vector<64x384xbf16>, vector<16x384xf32> -> vector<16x384xf32>
    %c0_10 = arith.constant 0 : index
    %c0_11 = arith.constant 0 : index
    %13 = vector.load %arg6[%c0_10, %c0_11] : memref<16x1xf32, #tpu.memory_space<vmem>>, vector<16x1xf32>
    %14 = vector.broadcast %13 : vector<16x1xf32> to vector<16x384xf32>
    %15 = arith.addf %12, %14 : vector<16x384xf32>
    %cst_12 = arith.constant 0.00999999977 : f32
    %16 = vector.broadcast %cst_12 : f32 to vector<16x384xf32>
    %17 = arith.mulf %16, %15 : vector<16x384xf32>
    %18 = arith.maximumf %15, %17 : vector<16x384xf32>
    %c0_13 = arith.constant 0 : index
    %c0_14 = arith.constant 0 : index
    %19 = vector.load %arg7[%c0_13, %c0_14] : memref<16x1xf32, #tpu.memory_space<vmem>>, vector<16x1xf32>
    %20 = vector.broadcast %19 : vector<16x1xf32> to vector<16x384xf32>
    %21 = arith.mulf %20, %18 : vector<16x384xf32>
    %cst_15 = arith.constant dense<0.000000e+00> : vector<384xf32>
    %22 = vector.multi_reduction <add>, %21, %cst_15 [0] : vector<16x384xf32> to vector<384xf32>
    %23 = vector.shape_cast %22 : vector<384xf32> to vector<1x384xf32>
    %c0_16 = arith.constant 0 : index
    %c0_17 = arith.constant 0 : index
    %24 = memref.load %arg8[%c0_16, %c0_17] : memref<1x1xf32, #tpu.memory_space<smem>>
    %25 = vector.broadcast %24 : f32 to vector<1x384xf32>
    %26 = arith.addf %23, %25 : vector<1x384xf32>
    %c0_18 = arith.constant 0 : index
    %c0_19 = arith.constant 0 : index
    %c0_20 = arith.constant 0 : index
    %27 = vector.load %arg9[%c0_18, %c0_19, %c0_20] : memref<1x1x384xf32, #tpu.memory_space<vmem>>, vector<1x1x384xf32>
    %28 = vector.shape_cast %27 : vector<1x1x384xf32> to vector<1x384xf32>
    %29 = vector.shape_cast %26 : vector<1x384xf32> to vector<1x1x384xf32>
    tpu.vector_store %arg9[%c0_18, %c0_19, %c0_20], %29 {strides = array<i32>} : memref<1x1x384xf32, #tpu.memory_space<vmem>>, vector<1x1x384xf32>,
    return
  }
  func.func @transform_0(%arg0: i32, %arg1: i32) -> (i32, i32, i32) {
    %c0_i32 = arith.constant 0 : i32
    %c0_i32_0 = arith.constant 0 : i32
    return %arg0, %c0_i32, %arg1 : i32, i32, i32
  }
  func.func @transform_1(%arg0: i32, %arg1: i32) -> (i32, i32) {
    %c0_i32 = arith.constant 0 : i32
    %c0_i32_0 = arith.constant 0 : i32
    %c0_i32_1 = arith.constant 0 : i32
    return %c0_i32, %c0_i32_0 : i32, i32
  }
  func.func @transform_2(%arg0: i32, %arg1: i32) -> (i32, i32) {
    %c0_i32 = arith.constant 0 : i32
    %c0_i32_0 = arith.constant 0 : i32
    %c0_i32_1 = arith.constant 0 : i32
    return %c0_i32, %c0_i32_0 : i32, i32
  }
  func.func @transform_3(%arg0: i32, %arg1: i32) -> (i32, i32) {
    %c0_i32 = arith.constant 0 : i32
    %c0_i32_0 = arith.constant 0 : i32
    %c0_i32_1 = arith.constant 0 : i32
    return %c0_i32, %c0_i32_0 : i32, i32
  }
  func.func @transform_4(%arg0: i32, %arg1: i32) -> (i32, i32) {
    %c0_i32 = arith.constant 0 : i32
    %c0_i32_0 = arith.constant 0 : i32
    %c0_i32_1 = arith.constant 0 : i32
    return %c0_i32, %c0_i32_0 : i32, i32
  }
  func.func @transform_5(%arg0: i32, %arg1: i32) -> (i32, i32) {
    %c0_i32 = arith.constant 0 : i32
    %c0_i32_0 = arith.constant 0 : i32
    %c0_i32_1 = arith.constant 0 : i32
    return %c0_i32, %c0_i32_0 : i32, i32
  }
  func.func @transform_6(%arg0: i32, %arg1: i32) -> (i32, i32) {
    %c0_i32 = arith.constant 0 : i32
    %c0_i32_0 = arith.constant 0 : i32
    %c0_i32_1 = arith.constant 0 : i32
    return %c0_i32, %c0_i32_0 : i32, i32
  }
  func.func @transform_7(%arg0: i32, %arg1: i32) -> (i32, i32, i32) {
    %c0_i32 = arith.constant 0 : i32
    %c0_i32_0 = arith.constant 0 : i32
    return %arg0, %c0_i32, %arg1 : i32, i32, i32
  }
}

</mosaic_0001>

<bundles_post_ra>
// kernel: tpu_custom_call.1
= control target key start
LH: loop header
LB: loop body
LE: loop exit
PB: predicated region body
PF: predicated region fallthrough
CT: control target
= control target key end

     0   :  { %s1900_s0 = inlined_call_operand.vmem [shape: bf16[2,256,300], index: 0, kind: input, shape index: {}]   ;;  %s1901_s1 = inlined_call_operand.vmem [shape: bf16[64,256], index: 1, kind: input, shape index: {}]   ;;  %s1902_s2 = inlined_call_operand.vmem [shape: f32[64,1], index: 2, kind: input, shape index: {}]   ;;  %s1903_s3 = inlined_call_operand.vmem [shape: bf16[16,64], index: 3, kind: input, shape index: {}]   ;;  %s1904_s4 = inlined_call_operand.vmem [shape: f32[16,1], index: 4, kind: input, shape index: {}]   ;;  %s1905_s5 = inlined_call_operand.vmem [shape: f32[16,1], index: 5, kind: input, shape index: {}]   ;;  %s1906_s6 = inlined_call_operand.<no memory space> [shape: f32[1,1], index: 6, kind: input, shape index: {}]   ;;  %s1907_s7 = inlined_call_operand.hbm [shape: f32[2,1,300], index: 7, kind: output, shape index: {}]  }
   0x1   :  { %12 = sst [smem:[#allocation2]] %s1906_s6 }
   0x2   :  { %13 = vsyncpa [#allocation4], 0 }
   0x3   :  { %15 = vsyncpa [#allocation4 + $0x1], 0  ;;  %s1604_s26 = smov 0   ;;  %s1606_s27 = smov 0  }
   0x4   :  { %s1608_s28 = smov 0   ;;  %s1610_s29 = smov 0  }
   0x5   :  { %s1612_s30 = smov 0   ;;  %s1614_s8 = smov 0  }
   0x6 LB: > { %s1212_s6 = sadd.s32 4294967295, %s1554_s8   ;;  %s1213_s9 = sadd.s32 4294967294, %s1554_s8   ;;  %s1554_s8 = sphi %s1614_s8, %s21_s8   ;;  %s1550_s30 = sphi %s1612_s30, %s1914_s30   ;;  %s1546_s29 = sphi %s1610_s29, %s1913_s29   ;;  %s1542_s28 = sphi %s1608_s28, %s1912_s28   ;;  %s1538_s27 = sphi %s1606_s27, %s1911_s27   ;;  %s1534_s26 = sphi %s1604_s26, %s1910_s26  }
   0x7   : > { %s33_s10 = sadd.s32 1, %s1550_s30  ;;  %s196_s11 = sadd.s32 1, %s1542_s28 }
   0x8   : > { %p35_p0 = scmp.ge.s32.totalorder %s33_s10, 2  ;;  %p206_p1 = scmp.ne.s32.totalorder %s1542_s28, %s1538_s27 }
   0x9   : > { %p207_p2 = scmp.eq.s32.totalorder %s1212_s6, 1  ;;  %p212_p3 = scmp.ne.s32.totalorder %s1538_s27, %s1534_s26 }
   0xa   : > { %s1916_s10 = smov (%p35_p0, %s33_s10), 0  ;;  %p213_p5 = scmp.eq.s32.totalorder %s1213_s9, 1 }
   0xb   : > { %p1644_p4 = por %p207_p2, %p206_p1  ;;  %s191_s13 = ssub.s32 %s1550_s30, %s1916_s10 }
   0xc   : > { %p1216_p6 = scmp.ge.s32.totalorder %s1554_s8, 1  ;;  %p194_p7 = scmp.eq.s32.totalorder %s191_s13, 0 }
   0xd   : > { %p1651_p8 = por %p213_p5, %p212_p3  ;;  %p262_p9 = scmp.lt.s32.totalorder %s1554_s8, 3 }
   0xe   : > { %s1657_s15 = scalar_select %p194_p7, %s1542_s28, %s196_s11  }
   0xf   : > { %p263_p10 = pnand %p1216_p6, %p262_p9 }
  0x10   : > { %p299_p11 = scmp.lt.s32.totalorder (!%p263_p10), %s1546_s29, 1  ;;  %s1082_s22 = sld [smem:[#allocation2]] (!%p263_p10) }
  0x11   : > { %266 = sbr.rel (%p263_p10) target bundleno = 595 (0x253), region = 48  ;;  %s295_s23 = sand.u32 (!%p263_p10), 1, %s1538_s27  }
  0x12   : > { %s1337_s25 = smul.u32 (!%p263_p10), 3, %s295_s23  ;;  %s1560_s20 = smov (!%p263_p10), [#allocation3]  }
  0x13   : > { %s1339_s6 = smul.u32 (!%p263_p10), 48, %s1546_s29 }
  0x14   : > { %s297_s9 = scalar_lea.vmem (!%p263_p10), [#allocation3], %s1337_s25 }
  0x15   : > { %s1136_s11 = sshll.u32 (!%p263_p10), %s297_s9, 4  ;;  %s1134_s17 = scalar_lea.hbm (!%p263_p10), %s1907_s7, %s1339_s6  ;;  %s1137_s11 = int_to_ptr.vmem [resolvable:$true] %s1136_s11 }
  0x16   : > { %v1461_v0 = vld [vmem:[%s1901_s1 + $0x4] ss:$8 sps:$4 sm:$0xff]   ;;  %v1556_v1 = vmov 0   ;;  %s300_s18 = scalar_select %p299_p11, %s1546_s29, 1  ;;  %v388_v2 = vld [vmem:[%s1902_s2 + $0x30] sm:$0xff]  ;;  %v389_v3 = vld [vmem:[%s1902_s2 + $0x38] sm:$0xff] }
  0x17   : > { %1399 = vset.pattern.permute.xlu0 %v1556_v1  ;;  %1400 = vset.pattern.permute.xlu1 %v1556_v1  ;;  %v386_v4 = vld [vmem:[%s1902_s2 + $0x20] sm:$0xff]  ;;  %v387_v5 = vld [vmem:[%s1902_s2 + $0x28] sm:$0xff]  ;;  %v384_v10 = vld [vmem:[%s1902_s2 + $0x10] sm:$0xff]  ;;  %vm943_vm0 = vcmask 523264   ;;  %vm1558_vm1 = vmmov 0  }
  0x18   : > { %831 = vmatprep.mubr.bf16.mxu1 %v1461_v0  ;;  %758 = vmatprep.mubr.bf16.mxu0 %v1461_v0  ;;  %s1338_s19 = smul.u32 384, %s300_s18  ;;  %v385_v44 = vld [vmem:[%s1902_s2 + $0x18] sm:$0xff]  ;;  %v382_v45 = vld [vmem:[%s1902_s2] sm:$0xff]  ;;  %v383_v48 = vld [vmem:[%s1902_s2 + $0x8] sm:$0xff]  ;;  %s1120_s18 = scalar_lea.sflag [#allocation4], %s295_s23 }
  0x19   : > { %422 = vperm.xlu0 %1399, %v388_v2   ;;  %412 = vperm.xlu1 %1400, %v386_v4   ;;  %v1459_v46 = vld [vmem:[%s1901_s1] ss:$8 sps:$4 sm:$0xff]   ;;  %v1468_v51 = vld [vmem:[%s1901_s1 + $0x14] ss:$8 sps:$4 sm:$0xff]   ;;  %v1470_v59 = vld [vmem:[%s1901_s1 + $0x10] ss:$8 sps:$4 sm:$0xff]  }
  0x1a   : > { %s1672_s24 = scalar_lea.vmem %s1900_s0, %s1338_s19  ;;  %v926_v50 = vld [vmem:[%s1904_s4] sm:$0xff]  ;;  %v927_v53 = vld [vmem:[%s1904_s4 + $0x8] sm:$0xff]  ;;  %s1478_s19 = scalar_lea.vmem %s1137_s11, 48 }
  0x1b   : > { %v1401_v6 = vld [vmem:[%s1672_s24 + $0xac] ss:$12 sps:$4 sm:$0xff]   ;;  %v1403_v7 = vld [vmem:[%s1672_s24 + $0xa8] ss:$12 sps:$4 sm:$0xff]   ;;  %v1406_v9 = vld [vmem:[%s1672_s24 + $0x90] ss:$12 sps:$4 sm:$0xff]   ;;  %p1479_p12 = scmp.ne.s32.totalorder %s1137_s11, %s1478_s19 }
  0x1c   : > { %726 = vmatprep.subr.bf16.mxu0 %v1401_v6  ;;  %v1404_v8 = vld [vmem:[%s1672_s24 + $0x94] ss:$12 sps:$4 sm:$0xff]   ;;  %v1407_v11 = vld [vmem:[%s1672_s24 + $0x7c] ss:$12 sps:$4 sm:$0xff]   ;;  %v1409_v12 = vld [vmem:[%s1672_s24 + $0x78] ss:$12 sps:$4 sm:$0xff]  }
  0x1d   : > { %727 = vmatpush1.bf16.msra.mxu0 %v1403_v7  ;;  %427 = vperm.xlu0 %1399, %v389_v3   ;;  %v1410_v13 = vld [vmem:[%s1672_s24 + $0x64] ss:$12 sps:$4 sm:$0xff]   ;;  %v1412_v15 = vld [vmem:[%s1672_s24 + $0x60] ss:$12 sps:$4 sm:$0xff]   ;;  %v1415_v20 = vld [vmem:[%s1672_s24 + $0x48] ss:$12 sps:$4 sm:$0xff]   ;;  %p1480_p13 = pnand %p1479_p12, %p1644_p4 }
  0x1e   : > { %728 = vmatprep.subr.bf16.mxu0 %v1404_v8  ;;  %417 = vperm.xlu1 %1400, %v387_v5   ;;  %v1421_v14 = vld [vmem:[%s1672_s24 + $0x170] ss:$12 sps:$4 sm:$0xff]   ;;  %v1413_v17 = vld [vmem:[%s1672_s24 + $0x4c] ss:$12 sps:$4 sm:$0xff]   ;;  %v1416_v21 = vld [vmem:[%s1672_s24 + $0x34] ss:$12 sps:$4 sm:$0xff]  }
  0x1f   : > { %1280 = vmatprep.subr.bf16.mxu1 %v1421_v14  ;;  %v1423_v16 = vld [vmem:[%s1672_s24 + $0xb0] ss:$12 sps:$4 sm:$0xff]   ;;  %v1426_v18 = vld [vmem:[%s1672_s24 + $0x158] ss:$12 sps:$4 sm:$0xff]   ;;  %v1431_v22 = vld [vmem:[%s1672_s24 + $0x140] ss:$12 sps:$4 sm:$0xff]   ;;  %p1481_p0 = pneg %p1480_p13 }
  0x20   : > { %1281 = vmatpush3.bf16.msra.mxu1 %v1423_v16  ;;  %v1428_v19 = vld [vmem:[%s1672_s24 + $0x98] ss:$12 sps:$4 sm:$0xff]   ;;  %v1433_v23 = vld [vmem:[%s1672_s24 + $0x80] ss:$12 sps:$4 sm:$0xff]   ;;  %v1418_v24 = vld [vmem:[%s1672_s24 + $0x30] ss:$12 sps:$4 sm:$0xff]  }
  0x21   : > { %729 = vmatpush1.bf16.msra.mxu0 %v1406_v9  ;;  %402 = vperm.xlu0 %1399, %v384_v10   ;;  %v1436_v25 = vld [vmem:[%s1672_s24 + $0x128] ss:$12 sps:$4 sm:$0xff]   ;;  %v1422_v28 = vld [vmem:[%s1672_s24 + $0x18] ss:$12 sps:$4 sm:$0xff]   ;;  %v1441_v29 = vld [vmem:[%s1672_s24 + $0x110] ss:$12 sps:$4 sm:$0xff]  }
  0x22   : > { %730 = vmatprep.subr.bf16.mxu0 %v1407_v11  ;;  %1282 = vmatprep.subr.bf16.mxu1 %v1426_v18  ;;  %v1419_v26 = vld [vmem:[%s1672_s24 + $0x1c] ss:$12 sps:$4 sm:$0xff]   ;;  %v1424_v30 = vld [vmem:[%s1672_s24 + $0x4] ss:$12 sps:$4 sm:$0xff]   ;;  %v1427_v33 = vld [vmem:[%s1672_s24] ss:$12 sps:$4 sm:$0xff]  }
  0x23   : > { %v1438_v27 = vld [vmem:[%s1672_s24 + $0x68] ss:$12 sps:$4 sm:$0xff]   ;;  %v1443_v31 = vld [vmem:[%s1672_s24 + $0x50] ss:$12 sps:$4 sm:$0xff]   ;;  %v1446_v32 = vld [vmem:[%s1672_s24 + $0xf8] ss:$12 sps:$4 sm:$0xff]   ;;  %407 = vperm.xlu1 %1400, %v385_v44  }
  0x24   : > { %1283 = vmatpush3.bf16.msra.mxu1 %v1428_v19  ;;  %v1429_v34 = vld [vmem:[%s1672_s24 + $0x16c] ss:$12 sps:$4 sm:$0xff]   ;;  %v1432_v37 = vld [vmem:[%s1672_s24 + $0x168] ss:$12 sps:$4 sm:$0xff]   ;;  %v1437_v41 = vld [vmem:[%s1672_s24 + $0x150] ss:$12 sps:$4 sm:$0xff]  }
  0x25   : > { %731 = vmatpush1.bf16.msra.mxu0 %v1409_v12  ;;  %1284 = vmatprep.subr.bf16.mxu1 %v1431_v22  ;;  %v1448_v35 = vld [vmem:[%s1672_s24 + $0x38] ss:$12 sps:$4 sm:$0xff]   ;;  %v1451_v36 = vld [vmem:[%s1672_s24 + $0xe0] ss:$12 sps:$4 sm:$0xff]   ;;  %v1456_v40 = vld [vmem:[%s1672_s24 + $0xc8] ss:$12 sps:$4 sm:$0xff]  }
  0x26   : > { %732 = vmatprep.subr.bf16.mxu0 %v1410_v13  ;;  %v1434_v38 = vld [vmem:[%s1672_s24 + $0x154] ss:$12 sps:$4 sm:$0xff]   ;;  %v1439_v42 = vld [vmem:[%s1672_s24 + $0x13c] ss:$12 sps:$4 sm:$0xff]   ;;  %v1442_v47 = vld [vmem:[%s1672_s24 + $0x138] ss:$12 sps:$4 sm:$0xff]   ;;  %392 = vperm.xlu0 %1399, %v382_v45  }
  0x27   : > { %v1453_v39 = vld [vmem:[%s1672_s24 + $0x20] ss:$12 sps:$4 sm:$0xff]   ;;  %v1458_v43 = vld [vmem:[%s1672_s24 + $0x8] ss:$12 sps:$4 sm:$0xff]   ;;  %v1444_v49 = vld [vmem:[%s1672_s24 + $0x124] ss:$12 sps:$4 sm:$0xff]   ;;  %397 = vperm.xlu1 %1400, %v383_v48  }
  0x28   : > { %1285 = vmatpush3.bf16.msra.mxu1 %v1433_v23  ;;  %v1447_v52 = vld [vmem:[%s1672_s24 + $0x120] ss:$12 sps:$4 sm:$0xff]   ;;  %v1452_v56 = vld [vmem:[%s1672_s24 + $0x108] ss:$12 sps:$4 sm:$0xff]   ;;  %v1457_v61 = vld [vmem:[%s1672_s24 + $0xf0] ss:$12 sps:$4 sm:$0xff]  }
  0x29   : > { %733 = vmatpush1.bf16.msra.mxu0 %v1412_v15  ;;  %1286 = vmatprep.subr.bf16.mxu1 %v1436_v25  ;;  %v1449_v54 = vld [vmem:[%s1672_s24 + $0x10c] ss:$12 sps:$4 sm:$0xff]   ;;  %v1043_v55 = vld [vmem:[%s1905_s5] sm:$0xff]  ;;  %v1462_v62 = vld [vmem:[%s1672_s24 + $0xdc] ss:$12 sps:$4 sm:$0xff]  }
  0x2a   : > { %734 = vmatprep.subr.bf16.mxu0 %v1413_v17  ;;  %930 = vperm.xlu0 %1399, %v926_v50   ;;  %v1044_v57 = vld [vmem:[%s1905_s5 + $0x8] sm:$0xff]  ;;  %v1454_v58 = vld [vmem:[%s1672_s24 + $0xf4] ss:$12 sps:$4 sm:$0xff]   ;;  %v1464_v63 = vld [vmem:[%s1672_s24 + $0xd8] ss:$12 sps:$4 sm:$0xff]  }
  0x2b   : > { %935 = vperm.xlu1 %1400, %v927_v53   ;;  %v1471_v60 = vld [vmem:[%s1901_s1 + $0x24] ss:$8 sps:$4 sm:$0xff]   ;;  %v1473_v2 = vld [vmem:[%s1901_s1 + $0x20] ss:$8 sps:$4 sm:$0xff]   ;;  %v1474_v3 = vld [vmem:[%s1901_s1 + $0x34] ss:$8 sps:$4 sm:$0xff]  }
  0x2c   : > { %1287 = vmatpush3.bf16.msra.mxu1 %v1438_v27  ;;  %v1465_v0 = vld [vmem:[%s1672_s24 + $0xc4] ss:$12 sps:$4 sm:$0xff]   ;;  %v1467_v4 = vld [vmem:[%s1672_s24 + $0xc0] ss:$12 sps:$4 sm:$0xff]   ;;  %s1482_s24 = sshll.u32 %s1560_s20, 4  ;;  %s1483_s24 = int_to_ptr.vmem [resolvable:$false] %s1482_s24 }
  0x2d   : > { %735 = vmatpush1.bf16.msra.mxu0 %v1415_v20  ;;  %1288 = vmatprep.subr.bf16.mxu1 %v1441_v29  ;;  %v1476_v5 = vld [vmem:[%s1901_s1 + $0x30] ss:$8 sps:$4 sm:$0xff]   ;;  %s1484_s29 = scalar_lea.vmem %s1483_s24, 96  ;;  %p1485_p1 = scmp.lt.s32.totalorder %s1137_s11, %s1483_s24 }
  0x2e   : > { %736 = vmatprep.subr.bf16.mxu0 %v1416_v21  ;;  %1047 = vperm.xlu0 %1399, %v1043_v55   ;;  %p1486_p2 = scmp.lt.s32.totalorder %s1484_s29, %s1478_s19 }
  0x2f   : > { %1052 = vperm.xlu1 %1400, %v1044_v57  }
  0x30   : > { %1289 = vmatpush3.bf16.msra.mxu1 %v1443_v31  ;;  %p1487_p3 = por %p1486_p2, %p1485_p1 }
  0x31   : > { %737 = vmatpush1.bf16.msra.mxu0 %v1418_v24  ;;  %1290 = vmatprep.subr.bf16.mxu1 %v1446_v32 }
  0x32   : > { %738 = vmatprep.subr.bf16.mxu0 %v1419_v26  ;;  %p1488_p5 = pnand %p1487_p3, %p1481_p0 }
  0x34   : > { %1291 = vmatpush3.bf16.msra.mxu1 %v1448_v35 }
  0x35   : > { %739 = vmatpush1.bf16.msra.mxu0 %v1422_v28  ;;  %1292 = vmatprep.subr.bf16.mxu1 %v1451_v36 }
  0x36   : > { %740 = vmatprep.subr.bf16.mxu0 %v1424_v30 }
  0x38   : > { %1293 = vmatpush3.bf16.msra.mxu1 %v1453_v39 }
  0x39   : > { %741 = vmatpush1.bf16.msra.mxu0 %v1427_v33  ;;  %1294 = vmatprep.subr.bf16.mxu1 %v1456_v40 }
  0x3a   : > { %742 = vmatprep.subr.bf16.mxu0 %v1429_v34 }
  0x3c   : > { %1295 = vmatpush3.bf16.msra.mxu1 %v1458_v43 }
  0x3d   : > { %743 = vmatpush2.bf16.msra.mxu0 %v1432_v37 }
  0x3e   : > { %744 = vmatprep.subr.bf16.mxu0 %v1434_v38 }
  0x3f   : > { %832 = vmatmul.mubr.bf16.vlgmr.msra.gmra.mxu1 %v1459_v46 }
  0x40   : > { %839 = vmatprep.mubr.bf16.mxu1 %v1468_v51 }
  0x41   : > { %745 = vmatpush2.bf16.msra.mxu0 %v1437_v41 }
  0x42   : > { %746 = vmatprep.subr.bf16.mxu0 %v1439_v42 }
  0x45   : > { %747 = vmatpush2.bf16.msra.mxu0 %v1442_v47 }
  0x46   : > { %748 = vmatprep.subr.bf16.mxu0 %v1444_v49 }
  0x47   : > { %840 = vmatmul.mubr.bf16.gmra.mxu1 %v1470_v59 }
  0x48   : > { %847 = vmatprep.mubr.bf16.mxu1 %v1471_v60 }
  0x49   : > { %749 = vmatpush2.bf16.msra.mxu0 %v1447_v52 }
  0x4a   : > { %750 = vmatprep.subr.bf16.mxu0 %v1449_v54 }
  0x4d   : > { %751 = vmatpush2.bf16.msra.mxu0 %v1452_v56 }
  0x4e   : > { %752 = vmatprep.subr.bf16.mxu0 %v1454_v58 }
  0x4f   : > { %848 = vmatmul.mubr.bf16.gmra.mxu1 %v1473_v2 }
  0x50   : > { %855 = vmatprep.mubr.bf16.mxu1 %v1474_v3 }
  0x51   : > { %753 = vmatpush2.bf16.msra.mxu0 %v1457_v61 }
  0x52   : > { %754 = vmatprep.subr.bf16.mxu0 %v1462_v62 }
  0x55   : > { %755 = vmatpush2.bf16.msra.mxu0 %v1464_v63 }
  0x56   : > { %756 = vmatprep.subr.bf16.mxu0 %v1465_v0 }
  0x57   : > { %856 = vmatmul.mubr.bf16.gmra.mxu1 %v1476_v5 }
  0x58   : > { %979 = vmatprep.mubr.bf16.mxu1 %v1556_v1 }
  0x59   : > { %757 = vmatpush2.bf16.msra.mxu0 %v1467_v4 }
  0x5c   : > { %759 = vmatmul.mubr.bf16.vlgmr.msra.gmra.mxu0 %v1459_v46 }
  0x5d   : > { %768 = vmatprep.mubr.bf16.mxu0 %v1468_v51 }
  0x64   : > { %769 = vmatmul.mubr.bf16.gmra.mxu0 %v1470_v59 }
  0x65   : > { %778 = vmatprep.mubr.bf16.mxu0 %v1471_v60 }
  0x6c   : > { %779 = vmatmul.mubr.bf16.gmra.mxu0 %v1473_v2 }
  0x6d   : > { %788 = vmatprep.mubr.bf16.mxu0 %v1474_v3 }
  0x74   : > { %789 = vmatmul.mubr.bf16.gmra.mxu0 %v1476_v5 }
  0x94   : > { %v1799_v22 = vpop.permute.xlu0 %422  ;;  %v1801_v24 = vpop.permute.xlu1 %412 }
  0x98   : > { %v1807_v29 = vpop.permute.xlu0 %427 }
  0x99   : > { %v1809_v31 = vpop.permute.xlu1 %417 }
  0x9c   : > { %v1811_v35 = vpop.permute.xlu0 %402 }
  0x9e   : > { %v1813_v37 = vpop.permute.xlu1 %407 }
  0xa1   : > { %v1823_v53 = vpop.permute.xlu0 %392 }
  0xa2   : > { %v1827_v57 = vpop.permute.xlu1 %397 }
  0xff   : > { %v1777_v6 = vpop.f32.mrf.mxu1 }
 0x101   : > { %v1779_v7 = vpop.f32.mrf.mxu1 }
 0x103   : > { %v1781_v8 = vpop.f32.mrf.mxu1 }
 0x105   : > { %v1783_v9 = vpop.f32.mrf.mxu1 }
 0x107   : > { %v1785_v10 = vpop.f32.mrf.mxu1 }
 0x109   : > { %v1787_v11 = vpop.f32.mrf.mxu1 }
 0x10b   : > { %v1789_v12 = vpop.f32.mrf.mxu1 }
 0x10d   : > { %v1793_v14 = vpop.f32.mrf.mxu1 }
 0x10f   : > { %v1795_v17 = vpop.f32.mrf.mxu1 }
 0x111   : > { %v1797_v20 = vpop.f32.mrf.mxu1 }
 0x113   : > { %v1803_v25 = vpop.f32.mrf.mxu1 }
 0x115   : > { %v1805_v28 = vpop.f32.mrf.mxu1 }
 0x117   : > { %v1314_v33 = vpop.f32.mrf.mxu1 }
 0x119   : > { %v1315_v38 = vpop.f32.mrf.mxu1 }
 0x11b   : > { %v1317_v48 = vpop.f32.mrf.mxu1 }
 0x11c   : > { %v1791_v1 = vpop.f32.mrf.mxu0 }
 0x11d   : > { %v1318_v4 = vpop.f32.mrf.mxu1 }
 0x11e   : > { %v762_v13 = vpop.f32.mrf.mxu0 }
 0x11f   : > { %v763_v56 = vadd.f32 %v762_v13, %v1823_v53 }
 0x120   : > { %v764_v15 = vpop.f32.mrf.mxu0 }
 0x122   : > { %v766_v16 = vpop.f32.mrf.mxu0 }
 0x123   : > { %v767_v61 = vadd.f32 %v766_v16, %v1827_v57 }
 0x124   : > { %v770_v18 = vpop.f32.mrf.mxu0 }
 0x125   : > { %v771_v13 = vadd.f32 %v770_v18, %v1811_v35  ;;  %v1310_v18 = vadd.f32 %v1797_v20, %v1795_v17  ;;  %v1304_v17 = vadd.f32 %v1787_v11, %v1785_v10  ;;  %v1301_v11 = vadd.f32 %v1783_v9, %v1781_v8 }
 0x126   : > { %v772_v19 = vpop.f32.mrf.mxu0  ;;  %v1557_v9 = vmov 0.0  }
 0x127   : > { %v773_v58 = vadd.f32 %v772_v19, %v1811_v35  ;;  %v837_v8 = vadd.f32 %v1301_v11, %v1827_v57 }
 0x128   : > { %v774_v21 = vpop.f32.mrf.mxu0 }
 0x129   : > { %v775_v62 = vadd.f32 %v774_v21, %v1813_v37  ;;  %v871_v19 = vmul.f32 0.01, %v773_v58  ;;  %v1319_v21 = vadd.f32 %v1318_v4, %v1317_v48 }
 0x12a   : > { %v776_v23 = vpop.f32.mrf.mxu0 }
 0x12b   : > { %v777_v45 = vadd.f32 %v776_v23, %v1813_v37  ;;  %v873_v16 = vmul.f32 0.01, %v775_v62 }
 0x12c   : > { %v780_v26 = vpop.f32.mrf.mxu0 }
 0x12d   : > { %v781_v54 = vadd.f32 %v780_v26, %v1801_v24  ;;  %v874_v2 = vmul.f32 0.01, %v777_v45  ;;  %v765_v26 = vadd.f32 %v764_v15, %v1827_v57  ;;  %v870_v15 = vmul.f32 0.01, %v771_v13 }
 0x12e   : > { %v782_v27 = vpop.f32.mrf.mxu0  ;;  %v897_v48 = vmax.f32 %v775_v62, %v873_v16  ;;  %v1298_v62 = vadd.f32 %v1779_v7, %v1777_v6 }
 0x12f   : > { %v783_v43 = vadd.f32 %v782_v27, %v1801_v24  ;;  %v876_v27 = vmul.f32 0.01, %v781_v54  ;;  %v894_v20 = vmax.f32 %v771_v13, %v870_v15 }
 0x130   : > { %v784_v30 = vpop.f32.mrf.mxu0  ;;  %v834_v6 = vadd.f32 %v1298_v62, %v1823_v53 }
 0x131   : > { %v785_v46 = vadd.f32 %v784_v30, %v1809_v31  ;;  %v877_v59 = vmul.f32 0.01, %v783_v43 }
 0x132   : > { %v786_v32 = vpop.f32.mrf.mxu0 }
 0x133   : > { %v787_v39 = vadd.f32 %v786_v32, %v1809_v31  ;;  %v879_v63 = vmul.f32 0.01, %v785_v46  ;;  %v901_v32 = vmax.f32 %v783_v43, %v877_v59  ;;  %v865_v43 = vmul.f32 0.01, %v763_v56 }
 0x134   : > { %v790_v34 = vpop.f32.mrf.mxu0  ;;  %v917_v59 = vpack.c.bf16 %v897_v48, %v894_v20 }
 0x135   : > { %v791_v41 = vadd.f32 %v790_v34, %v1799_v22  ;;  %v880_v49 = vmul.f32 0.01, %v787_v39  ;;  %v1316_v34 = vadd.f32 %v1315_v38, %v1314_v33  ;;  %v867_v33 = vmul.f32 0.01, %v765_v26 }
 0x136   : > { %v792_v36 = vpop.f32.mrf.mxu0  ;;  %v895_v38 = vmax.f32 %v773_v58, %v871_v19  ;;  %v1307_v58 = vadd.f32 %v1793_v14, %v1789_v12  ;;  %v842_v12 = vadd.f32 %v1304_v17, %v1811_v35 }
 0x137   : > { %v793_v40 = vadd.f32 %v792_v36, %v1799_v22  ;;  %v882_v55 = vmul.f32 0.01, %v791_v41  ;;  %v904_v3 = vmax.f32 %v787_v39, %v880_v49 }
 0x138   : > { %v794_v42 = vpop.f32.mrf.mxu0  ;;  %v845_v14 = vadd.f32 %v1307_v58, %v1813_v37  ;;  %v872_v7 = vmul.f32 0.01, %v842_v12 }
 0x139   : > { %v795_v44 = vadd.f32 %v794_v42, %v1807_v29  ;;  %v883_v50 = vmul.f32 0.01, %v793_v40  ;;  %v906_v30 = vmax.f32 %v791_v41, %v882_v55  ;;  %v903_v42 = vmax.f32 %v785_v46, %v879_v63 }
 0x13a   : > { %v796_v47 = vpop.f32.mrf.mxu0  ;;  %v921_v39 = vpack.c.bf16 %v904_v3, %v901_v32  ;;  %v900_v41 = vmax.f32 %v781_v54, %v876_v27  ;;  %v1313_v46 = vadd.f32 %v1805_v28, %v1803_v25  ;;  %v889_v54 = vmax.f32 %v763_v56, %v865_v43  ;;  %v931_v32 = vpop.permute.xlu0 %930 }
 0x13b   : > { %v885_v51 = vmul.f32 0.01, %v795_v44  ;;  %v797_v52 = vadd.f32 %v796_v47, %v1807_v29  ;;  %v907_v5 = vmax.f32 %v793_v40, %v883_v50  ;;  %v761_v40 = vadd.f32 %v1791_v1, %v1823_v53 }
 0x13c   : > { %v920_v49 = vpack.c.bf16 %v903_v42, %v900_v41  ;;  %v861_v50 = vadd.f32 %v1319_v21, %v1807_v29  ;;  %v850_v25 = vadd.f32 %v1310_v18, %v1801_v24  ;;  %v853_v28 = vadd.f32 %v1313_v46, %v1809_v31 }
 0x13d   : > { %v886_v60 = vmul.f32 0.01, %v797_v52  ;;  %v909_v0 = vmax.f32 %v795_v44, %v885_v51  ;;  %v868_v44 = vmul.f32 0.01, %v767_v61  ;;  %v898_v51 = vmax.f32 %v777_v45, %v874_v2  ;;  %v1477_v2 = vld [vmem:[%s1903_s3] sm:$0xff]  }
 0x13e   : > { %v858_v45 = vadd.f32 %v1316_v34, %v1799_v22  ;;  %v864_v55 = vmul.f32 0.01, %v761_v40  ;;  %v891_v22 = vmax.f32 %v765_v26, %v867_v33  ;;  %v878_v24 = vmul.f32 0.01, %v850_v25  ;;  %v1048_v46 = vpop.permute.xlu0 %1047 }
 0x13f   : > { %v910_v23 = vmax.f32 %v797_v52, %v886_v60  ;;  %v923_v47 = vpack.c.bf16 %v909_v0, %v906_v30  ;;  %v892_v1 = vmax.f32 %v767_v61, %v868_v44  ;;  %v918_v52 = vpack.c.bf16 %v898_v51, %v895_v38 }
 0x140   : > { %v884_v29 = vmul.f32 0.01, %v858_v45  ;;  %v887_v60 = vmul.f32 0.01, %v861_v50  ;;  %v888_v10 = vmax.f32 %v761_v40, %v864_v55  ;;  %v881_v56 = vmul.f32 0.01, %v853_v28 }
 0x141   : > { %v924_v36 = vpack.c.bf16 %v910_v23, %v907_v5  ;;  %v915_v61 = vpack.c.bf16 %v892_v1, %v889_v54  ;;  %v875_v35 = vmul.f32 0.01, %v845_v14  ;;  %v902_v37 = vmax.f32 %v850_v25, %v878_v24 }
 0x142   : > { %v914_v31 = vpack.c.bf16 %v891_v22, %v888_v10  ;;  %v908_v63 = vmax.f32 %v858_v45, %v884_v29  ;;  %v911_v0 = vmax.f32 %v861_v50, %v887_v60  ;;  %v905_v3 = vmax.f32 %v853_v28, %v881_v56 }
 0x143   : > { %955 = vmatprep.subr.bf16.mxu1 %v924_v36  ;;  %v866_v5 = vmul.f32 0.01, %v834_v6  ;;  %v896_v23 = vmax.f32 %v842_v12, %v872_v7  ;;  %v869_v26 = vmul.f32 0.01, %v837_v8  ;;  %v899_v13 = vmax.f32 %v845_v14, %v875_v35 }
 0x144   : > { %956 = vmatpush1.bf16.msra.mxu1 %v923_v47  ;;  %v925_v4 = vpack.c.bf16 %v911_v0, %v908_v63  ;;  %v922_v53 = vpack.c.bf16 %v905_v3, %v902_v37  ;;  %v936_v47 = vpop.permute.xlu1 %935  ;;  %v1559_v37 = vmov 1966171168  }
 0x145   : > { %957 = vmatprep.subr.bf16.mxu1 %v921_v39  ;;  %v890_v57 = vmax.f32 %v834_v6, %v866_v5  ;;  %v893_v27 = vmax.f32 %v837_v8, %v869_v26  ;;  %v919_v30 = vpack.c.bf16 %v899_v13, %v896_v23  ;;  %v1092_v3 = vunpack.c.l.s4 %v1559_v37 }
 0x146   : > { %v1083_v26 = vstv %s1082_s22 }
 0x147   : > { %v916_v19 = vpack.c.bf16 %v893_v27, %v890_v57  ;;  %v1093_v57 = vunpack.c.0.s8 %v1092_v3 }
 0x148   : > { %958 = vmatpush1.bf16.msra.mxu1 %v920_v49  ;;  %v1053_v48 = vpop.permute.xlu1 %1052 }
 0x149   : > { %959 = vmatprep.subr.bf16.mxu1 %v918_v52 }
 0x14c   : > { %960 = vmatpush1.bf16.msra.mxu1 %v917_v59 }
 0x14d   : > { %961 = vmatprep.subr.bf16.mxu1 %v915_v61 }
 0x150   : > { %962 = vmatpush1.bf16.msra.mxu1 %v914_v31 }
 0x151   : > { %1325 = vmatprep.subr.bf16.mxu1 %v1557_v9 }
 0x153   : > { %1275 = vmatmul.mubr.msk.bf16.vlgmr.msra.gmra.mxu1 %vm943_vm0, %v1477_v2 }
 0x154   : > { %1326 = vmatpush3.bf16.msra.mxu1 %v925_v4  ;;  %1333 = vmatprep.mubr.msk.bf16.mxu1 %vm1558_vm1, %v1557_v9  ;;  %v1094_v4 = vlaneseq }
 0x155   : > { %1327 = vmatprep.subr.bf16.mxu1 %v1557_v9 }
 0x156   : > { %v1095_v27 = vshrl.u32 %v1094_v4, 7  ;;  %vm1116_vm2 = vcmp.lt.s32.totalorder %v1094_v4, 384 }
 0x158   : > { %1328 = vmatpush3.bf16.msra.mxu1 %v922_v53 }
 0x159   : > { %1329 = vmatprep.subr.bf16.mxu1 %v1557_v9 }
 0x15c   : > { %1330 = vmatpush3.bf16.msra.mxu1 %v919_v30 }
 0x15d   : > { %1331 = vmatprep.subr.bf16.mxu1 %v1557_v9 }
 0x160   : > { %1332 = vmatpush3.bf16.msra.mxu1 %v916_v19 }
 0x163   : > { %1334 = vmatmul.mubr.msk.bf16.vlgmr.msra.gmra.mxu1 %vm943_vm0, %v1477_v2 }
 0x213   : > { %v981_v34 = vpop.f32.mrf.mxu1 }
 0x214   : > { %v982_v36 = vadd.f32 %v981_v34, %v931_v32 }
 0x215   : > { %v983_v16 = vpop.f32.mrf.mxu1 }
 0x216   : > { %v1031_v42 = vmul.f32 0.01, %v982_v36  ;;  %v984_v21 = vadd.f32 %v983_v16, %v931_v32 }
 0x217   : > { %v985_v44 = vpop.f32.mrf.mxu1 }
 0x218   : > { %v1032_v51 = vmul.f32 0.01, %v984_v21  ;;  %v986_v39 = vadd.f32 %v985_v44, %v936_v47  ;;  %v1037_v15 = vmax.f32 %v982_v36, %v1031_v42  ;;  %v1096_v36 = vsub.s32 %v1093_v57, %v1095_v27 }
 0x219   : > { %v987_v40 = vpop.f32.mrf.mxu1 }
 0x21a   : > { %v1034_v18 = vmul.f32 0.01, %v986_v39  ;;  %v988_v41 = vadd.f32 %v987_v40, %v936_v47  ;;  %v1038_v43 = vmax.f32 %v984_v21, %v1032_v51  ;;  %v1055_v45 = vmul.f32 %v1048_v46, %v1037_v15 }
 0x21c   : > { %v1040_v33 = vmax.f32 %v986_v39, %v1034_v18  ;;  %v1035_v38 = vmul.f32 0.01, %v988_v41  ;;  %v1056_v1 = vmul.f32 %v1048_v46, %v1038_v43 }
 0x21e   : > { %v1058_v49 = vmul.f32 %v1053_v48, %v1040_v33  ;;  %v1041_v50 = vmax.f32 %v988_v41, %v1035_v38 }
 0x220   : > { %v1061_v52 = vadd.f32 %v1058_v49, %v1055_v45  ;;  %v1059_v55 = vmul.f32 %v1053_v48, %v1041_v50 }
 0x222   : > { %v1062_v17 = vrot.slane %v1061_v52, 4  ;;  %v1068_v20 = vadd.f32 %v1059_v55, %v1056_v1 }
 0x223   : > { %v1024_v54 = vpop.f32.mrf.mxu1 }
 0x224   : > { %v1069_v58 = vrot.slane %v1068_v20, 4  ;;  %v1025_v25 = vadd.f32 %v1024_v54, %v931_v32  ;;  %v1063_v22 = vadd.f32 %v1062_v17, %v1061_v52 }
 0x225   : > { %v1335_v28 = vpop.f32.mrf.mxu1 }
 0x226   : > { %v1070_v59 = vadd.f32 %v1069_v58, %v1068_v20  ;;  %v1033_v29 = vmul.f32 0.01, %v1025_v25  ;;  %v1064_v11 = vrot.slane %v1063_v22, 2 }
 0x227   : > { %v1027_v60 = vpop.f32.mrf.mxu1 }
 0x228   : > { %v1071_v61 = vrot.slane %v1070_v59, 2  ;;  %v1028_v62 = vadd.f32 %v1027_v60, %v936_v47  ;;  %v1039_v12 = vmax.f32 %v1025_v25, %v1033_v29  ;;  %v1065_v56 = vadd.f32 %v1064_v11, %v1063_v22 }
 0x229   : > { %v1336_v10 = vpop.f32.mrf.mxu1 }
 0x22a   : > { %v1036_v14 = vmul.f32 0.01, %v1028_v62  ;;  %v1072_v24 = vadd.f32 %v1071_v61, %v1070_v59  ;;  %v1057_v63 = vmul.f32 %v1048_v46, %v1039_v12  ;;  %v1066_v7 = vrot.slane %v1065_v56, 1 }
 0x22c   : > { %v1042_v31 = vmax.f32 %v1028_v62, %v1036_v14  ;;  %v1073_v2 = vrot.slane %v1072_v24, 1  ;;  %v1067_v5 = vadd.f32 %v1066_v7, %v1065_v56 }
 0x22e   : > { %v1060_v0 = vmul.f32 %v1053_v48, %v1042_v31  ;;  %v1074_v9 = vadd.f32 %v1073_v2, %v1072_v24  ;;  %v1084_v30 = vadd.f32 %v1083_v26, %v1067_v5 }
 0x230   : > { %v1075_v6 = vadd.f32 %v1060_v0, %v1057_v63  ;;  %v1085_v13 = vadd.f32 %v1083_v26, %v1074_v9 }
 0x232   : > { %v1076_v8 = vrot.slane %v1075_v6, 4  ;;  %v1090_v34 = vcombine.low %v1084_v30, %v1085_v13 }
 0x234   : > { %v1077_v35 = vadd.f32 %v1076_v8, %v1075_v6  ;;  %v1097_v42 = vrot.slane %v1090_v34, %v1096_v36 }
 0x236   : > { %v1078_v23 = vrot.slane %v1077_v35, 2 }
 0x238   : > { %v1079_v53 = vadd.f32 %v1078_v23, %v1077_v35 }
 0x23a   : > { %v1080_v19 = vrot.slane %v1079_v53, 1 }
 0x23c   : > { %v1081_v32 = vadd.f32 %v1080_v19, %v1079_v53 }
 0x23e   : > { %v1086_v16 = vadd.f32 %v1083_v26, %v1081_v32 }
 0x240   : > { %v1104_v21 = vrot.slane %v1086_v16, %v1096_v36 }
 0x242   : > { %v1105_v47 = vcombine.low %v1097_v42, %v1104_v21 }
 0x244   : > { %v1112_v44 = vrot.slane %v1105_v47, %v1096_v36 }
 0x246   : > { %1118 = vst.msk [vmem:[%s297_s9] sm:$0x7] %vm1116_vm2, %v1112_v44 }
 0x247   : > { %1491 = shalt.err (!%p1488_p5)
}
 0x248   : > { %s1492_s21 = scalar_lea.hbm %s1134_s17, 48  ;;  %s1496_s25 = scalar_lea.hbm %s1907_s7, 96 }
 0x249   : > { %p1493_p6 = scmp.ne.s32.totalorder %s1134_s17, %s1492_s21  ;;  %p1497_p10 = scmp.lt.s32.totalorder %s1134_s17, %s1907_s7 }
 0x24a   : > { %p1498_p11 = scmp.lt.s32.totalorder %s1496_s25, %s1492_s21 }
 0x24b   : > { %p1494_p7 = pnand %p1493_p6, %p1644_p4 }
 0x24c   : > { %p1499_p12 = por %p1498_p11, %p1497_p10 }
 0x24d   : > { %p1495_p9 = pneg %p1494_p7 }
 0x24f   : > { %p1500_p13 = pnand %p1499_p12, %p1495_p9 }
 0x251   : > { %1503 = shalt.err (!%p1500_p13)
}
 0x252   : > { %1340 = dma.vmem_to_hbm [thread:$0]  (%p1644_p4), %s1137_s11, 48, %s1134_s17, %s1120_s18  }
 0x253 PF: > { %p1346_p0 = scmp.ge.s32.totalorder %s1554_s8, 2  ;;  %s1148_s13 = sand.u32 1, %s1534_s26  }
 0x254   : > { %s1149_s16 = scalar_lea.sflag [#allocation4], %s1148_s13 }
 0x255   : > { %p1343_p1 = pnand %p1346_p0, %p1651_p8 }
 0x257   : > { %p1344_p2 = pneg %p1343_p1 }
 0x259   : > { %1529 = dma.done.wait (%p1344_p2), %s1149_s16, 48  }
 0x25a   : > { %1531 = vsyncadd (%p1344_p2), %s1149_s16, 4294967248  ;;  %s21_s8 = sadd.s32 1, %s1554_s8   ;;  %s1910_s26 = smov %s1538_s27 }
 0x25b   : > { %p18_p3 = scmp.ge.s32.totalorder %s21_s8, 4   ;;  %s1911_s27 = smov %s1542_s28 }
 0x25c   : > { %s1912_s28 = smov %s1657_s15  ;;  %s1913_s29 = smov %s1550_s30 }
 0x25d   : > { %s1914_s30 = smov %s1916_s10  ;;  %20 = sbr.rel (!%p18_p3) target bundleno = 6 (0x6), region = 83 }
 0x262   :  { %1154 = vsyncpa [#allocation4], 1 }
 0x263   :  { %1156 = vsyncpa [#allocation4 + $0x1], 1 }

</bundles_post_ra>
